<compile_context>
chip_gen: v5e
topology: v5e:2x2
jax: 0.10.0
libtpu: 0.0.40
codegen_flags: <defaults>
</compile_context>

<pallas_src>
import functools

import jax
import jax.numpy as jnp
from jax import lax
from jax.experimental import pallas as pl
from jax.experimental.pallas import tpu as pltpu

_MATMUL_DTYPE = jnp.bfloat16   # MXU-native operand type on v5e/v6e/v7x


# ---------------------------------------------------------------------------
# Kernels
# ---------------------------------------------------------------------------

def _eval_head_kernel(x_ref, w_ref, b_ref, out_ref):
    """Eval mode: dropout is the identity, so all 5 averaged samples are
    bit-identical and the head collapses to a single matmul + bias."""
    out_ref[...] = (
        jnp.dot(x_ref[...], w_ref[...], preferred_element_type=jnp.float32)
        + b_ref[...].astype(jnp.float32)
    )


def _train_head_kernel(x_ref, bits_ref, w_ref, b_ref, out_ref, *,
                       n_dropouts: int):
    """Training mode (p = 0.5): mean_i(Linear(drop_i(x))) == Linear(mean_i(drop_i(x)))
    by linearity, so mask/average the activations first and issue ONE matmul.

    Each of the low `n_dropouts` bits of the uniform 32-bit word is an exact
    i.i.d. Bernoulli(0.5) keep decision, so
        mean_i(keep_i * x / keep_prob) = x * 2 * count / n_dropouts,
    with count ~ Binomial(n_dropouts, 0.5) per element."""
    bits = bits_ref[...]                                  # (TB, 4*D) int32
    count = bits & 1
    for i in range(1, n_dropouts):
        count = count + ((bits >> i) & 1)
    # Single hoisted scale: 2/n_dropouts (keep_prob = 0.5 -> 1/keep_prob = 2).
    factor = count.astype(jnp.float32) * jnp.float32(2.0 / n_dropouts)
    x_avg = (x_ref[...].astype(jnp.float32) * factor).astype(x_ref.dtype)

    out_ref[...] = (
        jnp.dot(x_avg, w_ref[...], preferred_element_type=jnp.float32)
        + b_ref[...].astype(jnp.float32)
    )


# ---------------------------------------------------------------------------
# Wrapper
# ---------------------------------------------------------------------------

@functools.partial(jax.jit,
                   static_argnames=("training", "p", "n_dropouts", "block_b"))
def bert_last_four_cls_head(h_m1, h_m2, h_m3, h_m4, weight, bias,
                            rng_key=None, *, training: bool = False,
                            p: float = 0.5, n_dropouts: int = 5,
                            block_b: int = 512):
    """h_m1..h_m4: (B, S, D) last four hidden states (h_m1 == hidden_states[-1]).
    weight: (n_class, 4*D) in PyTorch nn.Linear layout.  bias: (n_class,).
    rng_key: jax PRNG key for dropout (ignored when training=False).
    Returns logits (B, n_class) in float32."""
    B, S, D = h_m1.shape
    n_class, c4 = weight.shape
    assert c4 == 4 * D

    # CLS gather + lane-concat in the wrapper: only the (B, 4*D) CLS slab is
    # DMA'd into VMEM, and the head becomes a single lane-dense K=4*D matmul.
    x = jnp.concatenate(
        [h[:, 0, :] for h in (h_m1, h_m2, h_m3, h_m4)], axis=-1)     # (B, 4*D)

    # Tile over B so the pipeline overlaps x DMA with the matmul and the batch
    # never has to fit VMEM as one monolithic (double-buffered) block.
    tb = min(block_b, B)
    b_pad = pl.cdiv(B, tb) * tb
    if b_pad != B:
        x = jnp.pad(x, ((0, b_pad - B), (0, 0)))
    x = x.astype(_MATMUL_DTYPE)

    # Lane-dense output: pad the class dim up to a multiple of 128 so results
    # are written with full (unmasked) vector stores; slice back afterwards.
    # (Kept at 128, not 256 -- the head is memory-bound, wider N only adds bytes.)
    n_pad = ((n_class + 127) // 128) * 128
    w_p = jnp.pad(weight.T.astype(_MATMUL_DTYPE),
                  ((0, 0), (0, n_pad - n_class)))                    # (4*D, n_pad)
    b_p = jnp.pad(bias.astype(jnp.float32),
                  (0, n_pad - n_class)).reshape(1, n_pad)            # (1, n_pad)

    grid = (b_pad // tb,)
    out_shape = jax.ShapeDtypeStruct((b_pad, n_pad), jnp.float32)
    compiler_params = pltpu.CompilerParams(
        dimension_semantics=("parallel",),          # megacore on v7x, free elsewhere
        vmem_limit_bytes=32 * 1024 * 1024)          # fits default on v5e..v7x

    x_spec = pl.BlockSpec((tb, 4 * D), lambda i: (i, 0))
    w_spec = pl.BlockSpec((4 * D, n_pad), lambda i: (0, 0))          # resident
    b_spec = pl.BlockSpec((1, n_pad), lambda i: (0, 0))              # resident
    o_spec = pl.BlockSpec((tb, n_pad), lambda i: (i, 0))

    if not training:
        out = pl.pallas_call(
            _eval_head_kernel,
            out_shape=out_shape,
            grid=grid,
            in_specs=[x_spec, w_spec, b_spec],
            out_specs=o_spec,
            compiler_params=compiler_params,
        )(x, w_p, b_p)
    else:
        if p != 0.5:
            # TODO(synk): multi-draw threshold path for p != 0.5 (module uses 0.5).
            raise NotImplementedError("training dropout only implemented for p=0.5")
        assert n_dropouts <= 32
        if rng_key is None:
            rng_key = jax.random.PRNGKey(0)
        # One uniform 32-bit word per element; the kernel uses its low
        # n_dropouts bits as the 5 independent Bernoulli(0.5) keep decisions.
        bits = jax.random.bits(rng_key, (b_pad, 4 * D), dtype=jnp.uint32)
        bits = lax.bitcast_convert_type(bits, jnp.int32)

        kernel = functools.partial(_train_head_kernel, n_dropouts=n_dropouts)
        out = pl.pallas_call(
            kernel,
            out_shape=out_shape,
            grid=grid,
            in_specs=[x_spec,
                      pl.BlockSpec((tb, 4 * D), lambda i: (i, 0)),   # bits
                      w_spec, b_spec],
            out_specs=o_spec,
            compiler_params=compiler_params,
        )(x, bits, w_p, b_p)

    return out[:B, :n_class]


# ---------------------------------------------------------------------------
# Demo / self-test
# ---------------------------------------------------------------------------

if __name__ == "__main__":
    key = jax.random.PRNGKey(0)
    B, S, D, n_class = 2, 8, 32, 36            # bert_dim=32 -> concat_dim=128

    keys = jax.random.split(key, 7)
    # Stand-ins for hidden_states[-1], [-2], [-3], [-4] from the BERT encoder.
    hs = [jax.random.normal(keys[i], (B, S, D), jnp.float32) for i in range(4)]
    # Deterministic init for nn.Linear(4*D, n_class).
    weight = 0.02 * jax.random.normal(keys[4], (n_class, 4 * D), jnp.float32)
    bias = 0.02 * jax.random.normal(keys[5], (n_class,), jnp.float32)
    drop_key = keys[6]

    # --- eval mode (module.eval() inference path) ---
    logits = bert_last_four_cls_head(hs[0], hs[1], hs[2], hs[3], weight, bias,
                                     training=False)
    logits = jax.block_until_ready(logits)

    # Pure-JAX reference of the eval-mode forward (same bf16 operand precision).
    concat = jnp.concatenate([h[:, 0, :] for h in hs], axis=-1)     # (B, 4D)
    ref = jnp.dot(concat.astype(_MATMUL_DTYPE),
                  weight.T.astype(_MATMUL_DTYPE),
                  preferred_element_type=jnp.float32) + bias
    assert logits.shape == (B, n_class)
    assert jnp.allclose(logits, ref, atol=1e-2, rtol=1e-2), "mismatch vs reference"

    # --- training mode smoke test (5x dropout-averaged head) ---
    logits_tr = bert_last_four_cls_head(hs[0], hs[1], hs[2], hs[3], weight,
                                        bias, drop_key, training=True)
    logits_tr = jax.block_until_ready(logits_tr)
    assert logits_tr.shape == (B, n_class)
    assert bool(jnp.all(jnp.isfinite(logits_tr)))

    print("KERNEL_OK")
</pallas_src>

<mosaic_0001>
module attributes {stable_mosaic.version = 11 : i64} {
  func.func @_eval_head_kernel(%arg0: i32, %arg1: memref<2x128xbf16, #tpu.memory_space<vmem>>, %arg2: memref<128x128xbf16, #tpu.memory_space<vmem>>, %arg3: memref<1x128xf32, #tpu.memory_space<vmem>>, %arg4: memref<2x128xf32, #tpu.memory_space<vmem>>) attributes {dimension_semantics = [#tpu.dimension_semantics<parallel>], iteration_bounds = array<i64: 1>, scalar_prefetch = 0 : i64, scratch_operands = 0 : i64, tpu.core_type = #tpu.core_type<tc>, window_params = [{transform_indices = @transform_0, window_bounds = array<i64: 2, 128>}, {pipeline_mode = #tpu.pipeline_mode<synchronous>, transform_indices = @transform_1, window_bounds = array<i64: 128, 128>}, {pipeline_mode = #tpu.pipeline_mode<synchronous>, transform_indices = @transform_2, window_bounds = array<i64: 1, 128>}, {transform_indices = @transform_3, window_bounds = array<i64: 2, 128>}]} {
    %c0 = arith.constant 0 : index
    %c0_0 = arith.constant 0 : index
    %0 = vector.load %arg1[%c0, %c0_0] : memref<2x128xbf16, #tpu.memory_space<vmem>>, vector<2x128xbf16>
    %c0_1 = arith.constant 0 : index
    %c0_2 = arith.constant 0 : index
    %1 = vector.load %arg2[%c0_1, %c0_2] : memref<128x128xbf16, #tpu.memory_space<vmem>>, vector<128x128xbf16>
    %cst = arith.constant dense<0.000000e+00> : vector<2x128xf32>
    %2 = tpu.matmul %0, %1, %cst {dimension_numbers = #tpu.dot_dimension_numbers<[1], [0], [0], [1], [0, 0, 1, 1], [], []>} : vector<2x128xbf16>, vector<128x128xbf16>, vector<2x128xf32> -> vector<2x128xf32>
    %c0_3 = arith.constant 0 : index
    %c0_4 = arith.constant 0 : index
    %3 = vector.load %arg3[%c0_3, %c0_4] : memref<1x128xf32, #tpu.memory_space<vmem>>, vector<1x128xf32>
    %4 = vector.broadcast %3 : vector<1x128xf32> to vector<2x128xf32>
    %5 = arith.addf %2, %4 : vector<2x128xf32>
    %c0_5 = arith.constant 0 : index
    %c0_6 = arith.constant 0 : index
    %6 = vector.load %arg4[%c0_5, %c0_6] : memref<2x128xf32, #tpu.memory_space<vmem>>, vector<2x128xf32>
    tpu.vector_store %arg4[%c0_5, %c0_6], %5 {strides = array<i32>} : memref<2x128xf32, #tpu.memory_space<vmem>>, vector<2x128xf32>,
    return
  }
  func.func @transform_0(%arg0: i32) -> (i32, i32) {
    %c0_i32 = arith.constant 0 : i32
    %c0_i32_0 = arith.constant 0 : i32
    return %arg0, %c0_i32 : i32, i32
  }
  func.func @transform_1(%arg0: i32) -> (i32, i32) {
    %c0_i32 = arith.constant 0 : i32
    %c0_i32_0 = arith.constant 0 : i32
    %c0_i32_1 = arith.constant 0 : i32
    return %c0_i32, %c0_i32_0 : i32, i32
  }
  func.func @transform_2(%arg0: i32) -> (i32, i32) {
    %c0_i32 = arith.constant 0 : i32
    %c0_i32_0 = arith.constant 0 : i32
    %c0_i32_1 = arith.constant 0 : i32
    return %c0_i32, %c0_i32_0 : i32, i32
  }
  func.func @transform_3(%arg0: i32) -> (i32, i32) {
    %c0_i32 = arith.constant 0 : i32
    %c0_i32_0 = arith.constant 0 : i32
    return %arg0, %c0_i32 : i32, i32
  }
}

</mosaic_0001>

<bundles_post_ra>
// kernel: bert_last_four_cls_head.1
= control target key start
LH: loop header
LB: loop body
LE: loop exit
PB: predicated region body
PF: predicated region fallthrough
CT: control target
= control target key end

     0   :  { %s236_s0 = inlined_call_operand.vmem [shape: bf16[2,128], index: 0, kind: input, shape index: {}]   ;;  %s237_s1 = inlined_call_operand.vmem [shape: bf16[128,128], index: 1, kind: input, shape index: {}]   ;;  %s238_s2 = inlined_call_operand.vmem [shape: f32[1,128], index: 2, kind: input, shape index: {}]   ;;  %s239_s3 = inlined_call_operand.hbm [shape: f32[2,128], index: 3, kind: output, shape index: {}]  }
   0x1   :  { %v153_v0 = vld [vmem:[%s237_s1 + $0x38] sm:$0xff]  ;;  %v152_v1 = vld [vmem:[%s237_s1 + $0x30] sm:$0xff] }
   0x2   :  { %84 = vmatpush.bf16.msra.mxu0 %v153_v0 }
   0x3   :  { %8 = vsyncpa [#allocation3], 0  ;;  %v151_v2 = vld [vmem:[%s237_s1 + $0x28] sm:$0xff]  ;;  %v150_v3 = vld [vmem:[%s237_s1 + $0x20] sm:$0xff]  ;;  %s182_s5 = smov [#allocation2]   ;;  %s105_s9 = sshll.u32 %s239_s3, 4  ;;  %s106_s9 = int_to_ptr.hbm [resolvable:$true] %s105_s9 }
   0x4   :  { %v149_v4 = vld [vmem:[%s237_s1 + $0x18] sm:$0xff]  ;;  %v148_v5 = vld [vmem:[%s237_s1 + $0x10] sm:$0xff]  ;;  %v147_v6 = vld [vmem:[%s237_s1 + $0x8] sm:$0xff]  ;;  %s103_s6 = sshll.u32 %s182_s5, 4  ;;  %s104_s6 = int_to_ptr.vmem [resolvable:$true] %s103_s6 }
   0x5   :  { %v146_v7 = vld [vmem:[%s237_s1] sm:$0xff] }
   0x6   :  { %85 = vmatpush.bf16.msra.mxu0 %v152_v1  ;;  %v15_v8 = vld [vmem:[%s236_s0] sm:$0x1] }
   0x7   :  { %v155_v9 = vld [vmem:[%s238_s2] ss:$0 sm:$0xff] }
   0xa   :  { %86 = vmatpush.bf16.msra.mxu0 %v151_v2 }
   0xe   :  { %87 = vmatpush.bf16.msra.mxu0 %v150_v3 }
  0x12   :  { %88 = vmatpush.bf16.msra.mxu0 %v149_v4 }
  0x16   :  { %89 = vmatpush.bf16.msra.mxu0 %v148_v5 }
  0x1a   :  { %90 = vmatpush.bf16.msra.mxu0 %v147_v6 }
  0x1e   :  { %91 = vmatpush.bf16.msra.mxu0 %v146_v7 }
  0x21   :  { %92 = vmatmul.bf16.vlgmr.msra.gmra.mxu0 %v15_v8 }
  0x9e   :  { %v93_v10 = vpop.f32.mrf.mxu0 }
  0x9f   :  { %v94_v11 = vadd.f32 %v155_v9, %v93_v10 }
  0xa1   :  { %97 = vst [vmem:[#allocation2] sm:$0x3] %v94_v11 }
  0xa2   :  { %108 = dma.vmem_to_hbm [thread:$0]  %s104_s6, 32, %s106_s9, [#allocation3]  }
  0xa6   :  { %v95_v12 = vpop.f32.mrf.mxu0 }
  0xa7   :  { %180 = dma.done.wait [#allocation3], 32  }
  0xa8   :  { %181 = vsyncadd [#allocation3], 4294967264 }
  0xa9   :  { %113 = vsyncpa [#allocation3], 1 }

</bundles_post_ra>
